<compile_context>
chip_gen: v6e
topology: v6e:2x2x1
jax: 0.10.0
libtpu: 0.0.40
codegen_flags: <defaults>
</compile_context>

<pallas_src>
import jax
import jax.numpy as jnp
from jax import lax
from jax.experimental import pallas as pl
from jax.experimental.pallas import tpu as pltpu

_LANE = 128
_SUBLANE = 8
_VMEM_LIMIT = 48 * 1024 * 1024   # explicit scoped-VMEM limit (safe on v5e/v6e/v7x)


def _round_up(x, m):
    return ((x + m - 1) // m) * m


# --------------------------------------------------------------------------
# Input projection kernel: x_proj = X_emb @ W_ih^T + bias   (throughput part)
# --------------------------------------------------------------------------
def _input_proj_kernel(x_ref, w_ref, b_ref, o_ref):
    x = x_ref[...].astype(w_ref.dtype)                       # cast to MXU input dtype
    o_ref[...] = (jnp.dot(x, w_ref[...], preferred_element_type=jnp.float32)
                  + b_ref[...])                              # f32 accumulation


def _input_projection(x_emb, w_ihT, bias, tm):
    T_pad, Hp = x_emb.shape
    G = w_ihT.shape[1]                                       # 4 * Hp (>= 512: fills v6e/v7x MXU N)
    grid_spec = pltpu.PrefetchScalarGridSpec(
        num_scalar_prefetch=0,
        grid=(T_pad // tm,),
        in_specs=[
            pl.BlockSpec((tm, Hp), lambda i: (i, 0)),        # embedded tokens chunk
            pl.BlockSpec((Hp, G), lambda i: (0, 0)),         # W_ih^T resident
            pl.BlockSpec((1, G), lambda i: (0, 0)),          # fused bias resident
        ],
        out_specs=pl.BlockSpec((tm, G), lambda i: (i, 0)),
    )
    return pl.pallas_call(
        _input_proj_kernel,
        grid_spec=grid_spec,
        out_shape=jax.ShapeDtypeStruct((T_pad, G), jnp.float32),
        compiler_params=pltpu.CompilerParams(
            dimension_semantics=("parallel",),
            vmem_limit_bytes=_VMEM_LIMIT),
    )(x_emb, w_ihT, bias)


# --------------------------------------------------------------------------
# Recurrent kernel: gates = x_proj + h @ W_hh^T, TS steps per grid iteration
# --------------------------------------------------------------------------
def _make_recurrent_kernel(T, TS, Hp, T_pad):
    masked = (T != T_pad)

    def kernel(xp_ref, whh_ref, h0_ref, c0_ref,
               out_ref, hn_ref, cn_ref, h_sc, c_sc):
        chunk = pl.program_id(0)

        @pl.when(chunk == 0)
        def _init():
            h_sc[...] = h0_ref[...]
            c_sc[...] = c0_ref[...]

        cdt = whh_ref.dtype
        base_t = chunk * TS

        def step(s, carry):
            h, c = carry                                     # (1, Hp) f32 carries
            # Only the recurrent matmul sits on the serial chain; x_proj is precomputed.
            gates = (xp_ref[pl.ds(s, 1), :]
                     + jnp.dot(h.astype(cdt), whh_ref[...],
                               preferred_element_type=jnp.float32))   # (1, 4Hp) f32
            # Gate slices are whole 128-lane vregs (each gate owns an Hp block).
            i_g = jax.nn.sigmoid(gates[:, 0 * Hp:1 * Hp])
            f_g = jax.nn.sigmoid(gates[:, 1 * Hp:2 * Hp])
            g_g = jnp.tanh(gates[:, 2 * Hp:3 * Hp])
            o_g = jax.nn.sigmoid(gates[:, 3 * Hp:4 * Hp])
            c_new = f_g * c + i_g * g_g
            h_new = o_g * jnp.tanh(c_new)
            if masked:                                       # freeze state on padded steps
                valid = (base_t + s) < T
                h_new = jnp.where(valid, h_new, h)
                c_new = jnp.where(valid, c_new, c)
            out_ref[pl.ds(s, 1), :] = h_new                  # row of the dense (TS, Hp) block
            return (h_new, c_new)

        h, c = lax.fori_loop(0, TS, step, (h_sc[...], c_sc[...]), unroll=True)
        h_sc[...] = h
        c_sc[...] = c

        @pl.when(chunk == pl.num_programs(0) - 1)
        def _finalize():
            hn_ref[...] = h
            cn_ref[...] = c

    return kernel


# --------------------------------------------------------------------------
# Host-side wrapper (mirrors LSTMEncoder.forward, batch=1)
# --------------------------------------------------------------------------
def lstm_encoder_forward(token_ids, hidden, params, *, ts=32):
    """token_ids: int32 scalar (original single-step forward) or int32 array (T,)
    hidden:    (h0, c0), each (1, 1, H) float32
    returns:   (output (T, 1, H), (h_n (1, 1, H), c_n (1, 1, H)))"""
    H = params["hidden_size"]
    Hp = params["padded_hidden"]
    V = params["emb_padded"].shape[0]
    G = 4 * Hp

    toks = jnp.atleast_1d(jnp.asarray(token_ids, jnp.int32))
    T = int(toks.shape[0])
    TS = min(_round_up(ts, _SUBLANE), _round_up(T, _SUBLANE))
    T_pad = _round_up(T, TS)
    toks = jnp.clip(toks, 0, V - 1)                          # bounds-safe token ids
    toks_pad = jnp.pad(toks, (0, T_pad - T))

    # Hoisted input projection: embedding gather (tiny XLA op) + one batched MXU matmul.
    x_emb = jnp.take(params["emb_padded"], toks_pad, axis=0)          # (T_pad, Hp) f32
    x_proj = _input_projection(x_emb, params["w_ihT"], params["bias"], TS)

    h0 = jnp.zeros((1, Hp), jnp.float32).at[:, :H].set(
        hidden[0].reshape(1, H).astype(jnp.float32))
    c0 = jnp.zeros((1, Hp), jnp.float32).at[:, :H].set(
        hidden[1].reshape(1, H).astype(jnp.float32))

    n_chunks = T_pad // TS
    grid_spec = pltpu.PrefetchScalarGridSpec(
        num_scalar_prefetch=0,
        grid=(n_chunks,),
        in_specs=[
            pl.BlockSpec((TS, G), lambda t: (t, 0)),         # x_proj chunk (TS, 4Hp)
            pl.BlockSpec((Hp, G), lambda t: (0, 0)),         # W_hh^T resident in VMEM
            pl.BlockSpec((1, Hp), lambda t: (0, 0)),         # h0
            pl.BlockSpec((1, Hp), lambda t: (0, 0)),         # c0
        ],
        out_specs=[
            pl.BlockSpec((TS, Hp), lambda t: (t, 0)),        # per-step hidden (dense block)
            pl.BlockSpec((1, Hp), lambda t: (0, 0)),         # h_n (written on last chunk)
            pl.BlockSpec((1, Hp), lambda t: (0, 0)),         # c_n (written on last chunk)
        ],
        scratch_shapes=[pltpu.VMEM((1, Hp), jnp.float32),    # h carry
                        pltpu.VMEM((1, Hp), jnp.float32)],   # c carry
    )

    out_pad, h_n, c_n = pl.pallas_call(
        _make_recurrent_kernel(T, TS, Hp, T_pad),
        grid_spec=grid_spec,
        out_shape=(jax.ShapeDtypeStruct((T_pad, Hp), jnp.float32),
                   jax.ShapeDtypeStruct((1, Hp), jnp.float32),
                   jax.ShapeDtypeStruct((1, Hp), jnp.float32)),
        compiler_params=pltpu.CompilerParams(
            dimension_semantics=("arbitrary",),              # time chunks carry h/c state
            vmem_limit_bytes=_VMEM_LIMIT),
    )(x_proj, params["w_hhT"], h0, c0)

    out = out_pad[:T, :H].reshape(T, 1, H)
    return out, (h_n[:, :H].reshape(1, 1, H), c_n[:, :H].reshape(1, 1, H))


# --------------------------------------------------------------------------
# Parameter packing / init (nn.Embedding + nn.LSTM shapes, gate order [i,f,g,o])
# --------------------------------------------------------------------------
def _pack_gate_weights(w, H, Hp, dtype):
    """w: (4H, H) PyTorch layout -> (Hp, 4Hp): transposed, each gate padded to Hp lanes."""
    out = jnp.zeros((Hp, 4 * Hp), jnp.float32)
    for k in range(4):
        out = out.at[:H, k * Hp:k * Hp + H].set(w[k * H:(k + 1) * H, :].T)
    return out.astype(dtype)


def _pack_bias(b, H, Hp):
    out = jnp.zeros((4 * Hp,), jnp.float32)
    for k in range(4):
        out = out.at[k * Hp:k * Hp + H].set(b[k * H:(k + 1) * H])
    return out.reshape(1, 4 * Hp)


def init_params(key, input_size, hidden_size, weight_dtype=jnp.bfloat16):
    k_emb, k_wih, k_whh, k_bih, k_bhh = jax.random.split(key, 5)
    H = hidden_size
    Hp = _round_up(H, _LANE)
    bound = 1.0 / float(H) ** 0.5
    emb = jax.random.normal(k_emb, (input_size, H), jnp.float32)
    w_ih = jax.random.uniform(k_wih, (4 * H, H), jnp.float32, -bound, bound)
    w_hh = jax.random.uniform(k_whh, (4 * H, H), jnp.float32, -bound, bound)
    b_ih = jax.random.uniform(k_bih, (4 * H,), jnp.float32, -bound, bound)
    b_hh = jax.random.uniform(k_bhh, (4 * H,), jnp.float32, -bound, bound)

    emb_p = jnp.zeros((input_size, Hp), jnp.float32).at[:, :H].set(emb)
    return {
        "hidden_size": H,
        "padded_hidden": Hp,
        "emb_padded": emb_p,                                   # f32 (x_proj accumulated in f32)
        "w_ihT": _pack_gate_weights(w_ih, H, Hp, weight_dtype),
        "w_hhT": _pack_gate_weights(w_hh, H, Hp, weight_dtype),
        "bias": _pack_bias(b_ih + b_hh, H, Hp),                # f32 fused bias
        # raw PyTorch-layout copies for the pure-JAX reference
        "_emb": emb, "_w_ih": w_ih, "_w_hh": w_hh, "_b_ih": b_ih, "_b_hh": b_hh,
    }


def init_hidden(hidden_size):
    return (jnp.zeros((1, 1, hidden_size), jnp.float32),
            jnp.zeros((1, 1, hidden_size), jnp.float32))


def _reference_forward(token_ids, hidden, params):
    """Pure-JAX (f32) reference of the PyTorch forward, looped over the sequence."""
    emb = params["_emb"]
    H = emb.shape[1]
    w_ih, w_hh = params["_w_ih"], params["_w_hh"]
    b = params["_b_ih"] + params["_b_hh"]
    h = hidden[0].reshape(1, H)
    c = hidden[1].reshape(1, H)
    outs = []
    for tok in list(jnp.atleast_1d(jnp.asarray(token_ids, jnp.int32))):
        x = emb[tok].reshape(1, H)
        gates = x @ w_ih.T + h @ w_hh.T + b
        i_g = jax.nn.sigmoid(gates[:, 0 * H:1 * H])
        f_g = jax.nn.sigmoid(gates[:, 1 * H:2 * H])
        g_g = jnp.tanh(gates[:, 2 * H:3 * H])
        o_g = jax.nn.sigmoid(gates[:, 3 * H:4 * H])
        c = f_g * c + i_g * g_g
        h = o_g * jnp.tanh(c)
        outs.append(h)
    out = jnp.stack(outs).reshape(-1, 1, H)
    return out, (h.reshape(1, 1, H), c.reshape(1, 1, H))


if __name__ == "__main__":
    INPUT_SIZE = 64     # vocab size
    HIDDEN = 32         # padded internally to 128 lanes
    SEQ = 8

    key = jax.random.PRNGKey(0)
    hidden0 = init_hidden(HIDDEN)

    # (a) f32 weights, single-step forward: exactly the original module's forward(inp, hidden)
    params_f32 = init_params(key, INPUT_SIZE, HIDDEN, weight_dtype=jnp.float32)
    token = jnp.int32(7)
    out1, (h1, c1) = lstm_encoder_forward(token, hidden0, params_f32)
    jax.block_until_ready((out1, h1, c1))
    ref1, (rh1, rc1) = _reference_forward(token, hidden0, params_f32)
    assert out1.shape == (1, 1, HIDDEN)
    assert h1.shape == (1, 1, HIDDEN) and c1.shape == (1, 1, HIDDEN)
    assert jnp.allclose(out1, ref1, atol=1e-4)
    assert jnp.allclose(h1, rh1, atol=1e-4)
    assert jnp.allclose(c1, rc1, atol=1e-4)

    # (b) multi-token sequence (single chunk)
    toks = jax.random.randint(jax.random.PRNGKey(1), (SEQ,), 0, INPUT_SIZE, jnp.int32)
    outT, (hT, cT) = lstm_encoder_forward(toks, hidden0, params_f32)
    jax.block_until_ready((outT, hT, cT))
    refT, (rhT, rcT) = _reference_forward(toks, hidden0, params_f32)
    assert outT.shape == (SEQ, 1, HIDDEN)
    assert jnp.allclose(outT, refT, atol=1e-4)
    assert jnp.allclose(hT, rhT, atol=1e-4)
    assert jnp.allclose(cT, rcT, atol=1e-4)

    # (c) ragged length -> multiple chunks + masked tail (exercises cross-chunk state carry)
    toks11 = jax.random.randint(jax.random.PRNGKey(2), (11,), 0, INPUT_SIZE, jnp.int32)
    out11, (h11, c11) = lstm_encoder_forward(toks11, hidden0, params_f32, ts=8)
    jax.block_until_ready((out11, h11, c11))
    ref11, (rh11, rc11) = _reference_forward(toks11, hidden0, params_f32)
    assert out11.shape == (11, 1, HIDDEN)
    assert jnp.allclose(out11, ref11, atol=1e-4)
    assert jnp.allclose(h11, rh11, atol=1e-4)
    assert jnp.allclose(c11, rc11, atol=1e-4)

    # (d) default bf16 gate weights (halved HBM->VMEM weight traffic), f32 accumulation
    params_bf16 = init_params(key, INPUT_SIZE, HIDDEN)
    outB, (hB, cB) = lstm_encoder_forward(toks, hidden0, params_bf16)
    jax.block_until_ready((outB, hB, cB))
    assert outB.shape == (SEQ, 1, HIDDEN)
    assert jnp.allclose(outB, refT, atol=5e-2)
    assert jnp.allclose(hB, rhT, atol=5e-2)
    assert jnp.allclose(cB, rcT, atol=5e-2)

    print("KERNEL_OK")
</pallas_src>

<mosaic_0001>
module attributes {stable_mosaic.version = 11 : i64} {
  func.func @_input_proj_kernel(%arg0: i32, %arg1: memref<8x128xf32, #tpu.memory_space<vmem>>, %arg2: memref<128x512xf32, #tpu.memory_space<vmem>>, %arg3: memref<1x512xf32, #tpu.memory_space<vmem>>, %arg4: memref<8x512xf32, #tpu.memory_space<vmem>>) attributes {dimension_semantics = [#tpu.dimension_semantics<parallel>], iteration_bounds = array<i64: 1>, scalar_prefetch = 0 : i64, scratch_operands = 0 : i64, tpu.core_type = #tpu.core_type<tc>, window_params = [{transform_indices = @transform_0, window_bounds = array<i64: 8, 128>}, {pipeline_mode = #tpu.pipeline_mode<synchronous>, transform_indices = @transform_1, window_bounds = array<i64: 128, 512>}, {pipeline_mode = #tpu.pipeline_mode<synchronous>, transform_indices = @transform_2, window_bounds = array<i64: 1, 512>}, {transform_indices = @transform_3, window_bounds = array<i64: 8, 512>}]} {
    %c0 = arith.constant 0 : index
    %c0_0 = arith.constant 0 : index
    %0 = vector.load %arg1[%c0, %c0_0] : memref<8x128xf32, #tpu.memory_space<vmem>>, vector<8x128xf32>
    %c0_1 = arith.constant 0 : index
    %c0_2 = arith.constant 0 : index
    %1 = vector.load %arg2[%c0_1, %c0_2] : memref<128x512xf32, #tpu.memory_space<vmem>>, vector<128x512xf32>
    %cst = arith.constant dense<0.000000e+00> : vector<8x512xf32>
    %2 = tpu.matmul %0, %1, %cst {dimension_numbers = #tpu.dot_dimension_numbers<[1], [0], [0], [1], [0, 0, 1, 1], [], []>} : vector<8x128xf32>, vector<128x512xf32>, vector<8x512xf32> -> vector<8x512xf32>
    %c0_3 = arith.constant 0 : index
    %c0_4 = arith.constant 0 : index
    %3 = vector.load %arg3[%c0_3, %c0_4] : memref<1x512xf32, #tpu.memory_space<vmem>>, vector<1x512xf32>
    %4 = vector.broadcast %3 : vector<1x512xf32> to vector<8x512xf32>
    %5 = arith.addf %2, %4 : vector<8x512xf32>
    %c0_5 = arith.constant 0 : index
    %c0_6 = arith.constant 0 : index
    %6 = vector.load %arg4[%c0_5, %c0_6] : memref<8x512xf32, #tpu.memory_space<vmem>>, vector<8x512xf32>
    tpu.vector_store %arg4[%c0_5, %c0_6], %5 {strides = array<i32>} : memref<8x512xf32, #tpu.memory_space<vmem>>, vector<8x512xf32>,
    return
  }
  func.func @transform_0(%arg0: i32) -> (i32, i32) {
    %c0_i32 = arith.constant 0 : i32
    %c0_i32_0 = arith.constant 0 : i32
    return %arg0, %c0_i32 : i32, i32
  }
  func.func @transform_1(%arg0: i32) -> (i32, i32) {
    %c0_i32 = arith.constant 0 : i32
    %c0_i32_0 = arith.constant 0 : i32
    %c0_i32_1 = arith.constant 0 : i32
    return %c0_i32, %c0_i32_0 : i32, i32
  }
  func.func @transform_2(%arg0: i32) -> (i32, i32) {
    %c0_i32 = arith.constant 0 : i32
    %c0_i32_0 = arith.constant 0 : i32
    %c0_i32_1 = arith.constant 0 : i32
    return %c0_i32, %c0_i32_0 : i32, i32
  }
  func.func @transform_3(%arg0: i32) -> (i32, i32) {
    %c0_i32 = arith.constant 0 : i32
    %c0_i32_0 = arith.constant 0 : i32
    return %arg0, %c0_i32 : i32, i32
  }
}

</mosaic_0001>

<bundles_post_ra>
// kernel: tpu_custom_call.1
= control target key start
LH: loop header
LB: loop body
LE: loop exit
PB: predicated region body
PF: predicated region fallthrough
CT: control target
= control target key end

     0   :  { %8 = vsyncpa [#allocation3], 0  ;;  %s433_s0 = inlined_call_operand.hbm [shape: f32[8,128], index: 0, kind: input, shape index: {}]   ;;  %s434_s1 = inlined_call_operand.hbm [shape: f32[128,512], index: 1, kind: input, shape index: {}]   ;;  %s435_s2 = inlined_call_operand.hbm [shape: f32[1,512], index: 2, kind: input, shape index: {}]   ;;  %s436_s3 = inlined_call_operand.hbm [shape: f32[8,512], index: 3, kind: output, shape index: {}]  }
   0x1   :  { %9 = vsyncpa [#allocation6], 0 }
   0x2   :  { %10 = vsyncpa [#allocation4], 0  ;;  %s394_s12 = smov [#allocation5]  }
   0x3   :  { %s26_s13 = sshll.u32 %s394_s12, 4  ;;  %s27_s13 = int_to_ptr.vmem [resolvable:$true] %s26_s13 }
   0x4   :  { %s316_s14 = scalar_lea.vmem %s27_s13, 8192  ;;  %p321_p1 = scmp.lt.s32.totalorder %s27_s13, %s27_s13 }
   0x5   :  { %p317_p0 = scmp.ne.s32.totalorder %s27_s13, %s316_s14  ;;  %p322_p2 = scmp.lt.s32.totalorder %s316_s14, %s316_s14 }
   0x7   :  { %p323_p3 = por %p322_p2, %p321_p1 }
   0x9   :  { %p324_p4 = pnand %p323_p3, %p317_p0 }
   0xb   :  { %327 = shalt.err (!%p324_p4)
}
   0xc   :  { %s395_s15 = smov 512   ;;  %s396_s16 = smov 32  }
   0xd   :  { %32 = dma.hbm_to_vmem [thread:$0]  %s434_s1, 8192, %s27_s13, [#allocation6], %s395_s15, %s395_s15, %s396_s16  }
   0xe   :  { %s397_s19 = smov [#allocation2]   ;;  %s398_s21 = smov [#allocation7]  }
   0xf   :  { %s17_s20 = sshll.u32 %s397_s19, 4  ;;  %s39_s22 = sshll.u32 %s398_s21, 4  ;;  %s18_s20 = int_to_ptr.vmem [resolvable:$true] %s17_s20  ;;  %s40_s22 = int_to_ptr.vmem [resolvable:$true] %s39_s22 }
  0x10   :  { %s336_s23 = scalar_lea.vmem %s18_s20, 128  ;;  %p341_p6 = scmp.lt.s32.totalorder %s18_s20, %s18_s20 }
  0x11   :  { %p337_p5 = scmp.ne.s32.totalorder %s18_s20, %s336_s23  ;;  %p342_p7 = scmp.lt.s32.totalorder %s336_s23, %s336_s23 }
  0x13   :  { %p343_p8 = por %p342_p7, %p341_p6 }
  0x15   :  { %p344_p9 = pnand %p343_p8, %p337_p5 }
  0x17   :  { %347 = shalt.err (!%p344_p9)
}
  0x18   :  { %20 = dma.hbm_to_vmem [thread:$0]  %s433_s0, 128, %s18_s20, [#allocation3]  }
  0x19   :  { %s356_s26 = scalar_lea.vmem %s40_s22, 64  ;;  %p361_p11 = scmp.lt.s32.totalorder %s40_s22, %s40_s22 }
  0x1a   :  { %p357_p10 = scmp.ne.s32.totalorder %s40_s22, %s356_s26  ;;  %p362_p12 = scmp.lt.s32.totalorder %s356_s26, %s356_s26 }
  0x1c   :  { %p363_p13 = por %p362_p12, %p361_p11 }
  0x1e   :  { %p364_p0 = pnand %p363_p13, %p357_p10 }
  0x20   :  { %367 = shalt.err (!%p364_p0)
}
  0x21   :  { %42 = dma.hbm_to_vmem [thread:$0]  %s435_s2, 64, %s40_s22, [#allocation6]  }
  0x22   :  { %388 = dma.done.wait [#allocation3], 128  }
  0x23   :  { %389 = vsyncadd [#allocation3], 4294967168 }
  0x24   :  { %390 = dma.done.wait [#allocation6], 8256  }
  0x25   :  { %391 = vsyncadd [#allocation6], 4294959040  ;;  %v399_v0 = vmov 0.0   ;;  %v114_v1 = vld [vmem:[#allocation5 + $0x1e8] sm:$0xff]  ;;  %v116_v2 = vld [vmem:[#allocation5 + $0x1f8] sm:$0xff]  ;;  %s400_s0 = smov [#allocation8]  }
  0x26   :  { %203 = vmatprep.mubr.f32.mxu0 %v399_v0  ;;  %274 = vmatprep.mubr.f32.mxu1 %v399_v0  ;;  %v113_v3 = vld [vmem:[#allocation5 + $0x1e0] sm:$0xff]  ;;  %v115_v4 = vld [vmem:[#allocation5 + $0x1f0] sm:$0xff]  ;;  %v110_v5 = vld [vmem:[#allocation5 + $0x1c8] sm:$0xff]  ;;  %s291_s2 = sshll.u32 %s400_s0, 4  ;;  %s292_s2 = int_to_ptr.vmem [resolvable:$true] %s291_s2 }
  0x27   :  { %139 = vmatprep.subr.mxu0 %v114_v1  ;;  %210 = vmatprep.subr.mxu1 %v116_v2  ;;  %v112_v6 = vld [vmem:[#allocation5 + $0x1d8] sm:$0xff]  ;;  %v109_v7 = vld [vmem:[#allocation5 + $0x1c0] sm:$0xff]  ;;  %v111_v8 = vld [vmem:[#allocation5 + $0x1d0] sm:$0xff]  ;;  %v119_v2 = vlaneseq  ;;  %s368_s28 = scalar_lea.vmem %s292_s2, 512  ;;  %p373_p2 = scmp.lt.s32.totalorder %s292_s2, %s292_s2 }
  0x28   :  { %140 = vmatpush1.msra.mxu0 %v113_v3  ;;  %211 = vmatpush1.msra.mxu1 %v115_v4  ;;  %v106_v9 = vld [vmem:[#allocation5 + $0x1a8] sm:$0xff]  ;;  %v108_v10 = vld [vmem:[#allocation5 + $0x1b8] sm:$0xff]  ;;  %v105_v11 = vld [vmem:[#allocation5 + $0x1a0] sm:$0xff]  ;;  %p369_p1 = scmp.ne.s32.totalorder %s292_s2, %s368_s28  ;;  %p374_p3 = scmp.lt.s32.totalorder %s368_s28, %s368_s28 }
  0x29   :  { %141 = vmatprep.subr.mxu0 %v110_v5  ;;  %212 = vmatprep.subr.mxu1 %v112_v6  ;;  %v107_v12 = vld [vmem:[#allocation5 + $0x1b0] sm:$0xff]  ;;  %v102_v13 = vld [vmem:[#allocation5 + $0x188] sm:$0xff]  ;;  %v104_v14 = vld [vmem:[#allocation5 + $0x198] sm:$0xff]  ;;  %v120_v3 = vshrl.u32 %v119_v2, 7 }
  0x2a   :  { %142 = vmatpush1.msra.mxu0 %v109_v7  ;;  %213 = vmatpush1.msra.mxu1 %v111_v8  ;;  %v101_v15 = vld [vmem:[#allocation5 + $0x180] sm:$0xff]  ;;  %v103_v16 = vld [vmem:[#allocation5 + $0x190] sm:$0xff]  ;;  %v98_v17 = vld [vmem:[#allocation5 + $0x168] sm:$0xff]  ;;  %p375_p4 = por %p374_p3, %p373_p2 }
  0x2b   :  { %143 = vmatprep.subr.mxu0 %v106_v9  ;;  %214 = vmatprep.subr.mxu1 %v108_v10  ;;  %v100_v18 = vld [vmem:[#allocation5 + $0x178] sm:$0xff]  ;;  %v97_v19 = vld [vmem:[#allocation5 + $0x160] sm:$0xff]  ;;  %v99_v20 = vld [vmem:[#allocation5 + $0x170] sm:$0xff]  ;;  %v121_v4 = vsub.s32 0, %v120_v3  ;;  %v129_v5 = vsub.s32 2, %v120_v3  ;;  %v125_v7 = vsub.s32 1, %v120_v3 }
  0x2c   :  { %144 = vmatpush1.msra.mxu0 %v105_v11  ;;  %215 = vmatpush1.msra.mxu1 %v107_v12  ;;  %v94_v21 = vld [vmem:[#allocation5 + $0x148] sm:$0xff]  ;;  %v96_v22 = vld [vmem:[#allocation5 + $0x158] sm:$0xff]  ;;  %v93_v23 = vld [vmem:[#allocation5 + $0x140] sm:$0xff]  ;;  %v133_v8 = vsub.s32 3, %v120_v3  ;;  %p376_p5 = pnand %p375_p4, %p369_p1 }
  0x2d   :  { %145 = vmatprep.subr.mxu0 %v102_v13  ;;  %216 = vmatprep.subr.mxu1 %v104_v14  ;;  %v95_v24 = vld [vmem:[#allocation5 + $0x150] sm:$0xff]  ;;  %v90_v25 = vld [vmem:[#allocation5 + $0x128] sm:$0xff]  ;;  %v92_v26 = vld [vmem:[#allocation5 + $0x138] sm:$0xff] }
  0x2e   :  { %146 = vmatpush1.msra.mxu0 %v101_v15  ;;  %217 = vmatpush1.msra.mxu1 %v103_v16  ;;  %v89_v27 = vld [vmem:[#allocation5 + $0x120] sm:$0xff]  ;;  %v91_v28 = vld [vmem:[#allocation5 + $0x130] sm:$0xff]  ;;  %v86_v29 = vld [vmem:[#allocation5 + $0x108] sm:$0xff] }
  0x2f   :  { %147 = vmatprep.subr.mxu0 %v98_v17  ;;  %218 = vmatprep.subr.mxu1 %v100_v18  ;;  %v88_v30 = vld [vmem:[#allocation5 + $0x118] sm:$0xff]  ;;  %v85_v31 = vld [vmem:[#allocation5 + $0x100] sm:$0xff]  ;;  %v87_v32 = vld [vmem:[#allocation5 + $0x110] sm:$0xff] }
  0x30   :  { %148 = vmatpush1.msra.mxu0 %v97_v19  ;;  %219 = vmatpush1.msra.mxu1 %v99_v20  ;;  %v82_v33 = vld [vmem:[#allocation5 + $0xe8] sm:$0xff]  ;;  %v84_v34 = vld [vmem:[#allocation5 + $0xf8] sm:$0xff]  ;;  %v81_v35 = vld [vmem:[#allocation5 + $0xe0] sm:$0xff] }
  0x31   :  { %149 = vmatprep.subr.mxu0 %v94_v21  ;;  %220 = vmatprep.subr.mxu1 %v96_v22  ;;  %v83_v36 = vld [vmem:[#allocation5 + $0xf0] sm:$0xff]  ;;  %v78_v37 = vld [vmem:[#allocation5 + $0xc8] sm:$0xff]  ;;  %v80_v38 = vld [vmem:[#allocation5 + $0xd8] sm:$0xff] }
  0x32   :  { %150 = vmatpush1.msra.mxu0 %v93_v23  ;;  %221 = vmatpush1.msra.mxu1 %v95_v24  ;;  %v77_v39 = vld [vmem:[#allocation5 + $0xc0] sm:$0xff]  ;;  %v79_v40 = vld [vmem:[#allocation5 + $0xd0] sm:$0xff]  ;;  %v74_v41 = vld [vmem:[#allocation5 + $0xa8] sm:$0xff] }
  0x33   :  { %151 = vmatprep.subr.mxu0 %v90_v25  ;;  %222 = vmatprep.subr.mxu1 %v92_v26  ;;  %v76_v42 = vld [vmem:[#allocation5 + $0xb8] sm:$0xff]  ;;  %v73_v43 = vld [vmem:[#allocation5 + $0xa0] sm:$0xff]  ;;  %v75_v44 = vld [vmem:[#allocation5 + $0xb0] sm:$0xff] }
  0x34   :  { %152 = vmatpush1.msra.mxu0 %v89_v27  ;;  %223 = vmatpush1.msra.mxu1 %v91_v28  ;;  %v70_v45 = vld [vmem:[#allocation5 + $0x88] sm:$0xff]  ;;  %v72_v46 = vld [vmem:[#allocation5 + $0x98] sm:$0xff]  ;;  %v69_v47 = vld [vmem:[#allocation5 + $0x80] sm:$0xff] }
  0x35   :  { %153 = vmatprep.subr.mxu0 %v86_v29  ;;  %224 = vmatprep.subr.mxu1 %v88_v30  ;;  %v71_v48 = vld [vmem:[#allocation5 + $0x90] sm:$0xff]  ;;  %v66_v49 = vld [vmem:[#allocation5 + $0x68] sm:$0xff]  ;;  %v68_v50 = vld [vmem:[#allocation5 + $0x78] sm:$0xff] }
  0x36   :  { %154 = vmatpush1.msra.mxu0 %v85_v31  ;;  %225 = vmatpush1.msra.mxu1 %v87_v32  ;;  %v65_v51 = vld [vmem:[#allocation5 + $0x60] sm:$0xff]  ;;  %v67_v52 = vld [vmem:[#allocation5 + $0x70] sm:$0xff]  ;;  %v62_v53 = vld [vmem:[#allocation5 + $0x48] sm:$0xff] }
  0x37   :  { %155 = vmatprep.subr.mxu0 %v82_v33  ;;  %226 = vmatprep.subr.mxu1 %v84_v34  ;;  %v64_v54 = vld [vmem:[#allocation5 + $0x58] sm:$0xff]  ;;  %v61_v55 = vld [vmem:[#allocation5 + $0x40] sm:$0xff]  ;;  %v63_v56 = vld [vmem:[#allocation5 + $0x50] sm:$0xff] }
  0x38   :  { %156 = vmatpush1.msra.mxu0 %v81_v35  ;;  %227 = vmatpush1.msra.mxu1 %v83_v36  ;;  %v58_v57 = vld [vmem:[#allocation5 + $0x28] sm:$0xff]  ;;  %v60_v58 = vld [vmem:[#allocation5 + $0x38] sm:$0xff]  ;;  %v57_v59 = vld [vmem:[#allocation5 + $0x20] sm:$0xff] }
  0x39   :  { %157 = vmatprep.subr.mxu0 %v78_v37  ;;  %228 = vmatprep.subr.mxu1 %v80_v38  ;;  %v59_v60 = vld [vmem:[#allocation5 + $0x30] sm:$0xff]  ;;  %v54_v61 = vld [vmem:[#allocation5 + $0x8] sm:$0xff]  ;;  %v56_v62 = vld [vmem:[#allocation5 + $0x18] sm:$0xff] }
  0x3a   :  { %158 = vmatpush1.msra.mxu0 %v77_v39  ;;  %229 = vmatpush1.msra.mxu1 %v79_v40  ;;  %v53_v63 = vld [vmem:[#allocation5] sm:$0xff]  ;;  %v55_v0 = vld [vmem:[#allocation5 + $0x10] sm:$0xff]  ;;  %v52_v1 = vld [vmem:[#allocation2] sm:$0xff] }
  0x3b   :  { %159 = vmatprep.subr.mxu0 %v74_v41  ;;  %230 = vmatprep.subr.mxu1 %v76_v42  ;;  %v117_v6 = vld [vmem:[#allocation7] sm:$0xf] }
  0x3c   :  { %160 = vmatpush1.msra.mxu0 %v73_v43  ;;  %231 = vmatpush1.msra.mxu1 %v75_v44  ;;  %v122_v9 = vrot.slane %v117_v6, %v121_v4  ;;  %v130_v10 = vrot.slane %v117_v6, %v129_v5  ;;  %v126_v11 = vrot.slane %v117_v6, %v125_v7 }
  0x3d   :  { %161 = vmatprep.subr.mxu0 %v70_v45  ;;  %232 = vmatprep.subr.mxu1 %v72_v46  ;;  %v134_v12 = vrot.slane %v117_v6, %v133_v8 }
  0x3e   :  { %162 = vmatpush1.msra.mxu0 %v69_v47  ;;  %233 = vmatpush1.msra.mxu1 %v71_v48 }
  0x3f   :  { %163 = vmatprep.subr.mxu0 %v66_v49  ;;  %234 = vmatprep.subr.mxu1 %v68_v50 }
  0x40   :  { %164 = vmatpush1.msra.mxu0 %v65_v51  ;;  %235 = vmatpush1.msra.mxu1 %v67_v52 }
  0x41   :  { %165 = vmatprep.subr.mxu0 %v62_v53  ;;  %236 = vmatprep.subr.mxu1 %v64_v54 }
  0x42   :  { %166 = vmatpush1.msra.mxu0 %v61_v55  ;;  %237 = vmatpush1.msra.mxu1 %v63_v56 }
  0x43   :  { %167 = vmatprep.subr.mxu0 %v58_v57  ;;  %238 = vmatprep.subr.mxu1 %v60_v58 }
  0x44   :  { %168 = vmatpush1.msra.mxu0 %v57_v59  ;;  %239 = vmatpush1.msra.mxu1 %v59_v60 }
  0x45   :  { %169 = vmatprep.subr.mxu0 %v54_v61  ;;  %240 = vmatprep.subr.mxu1 %v56_v62 }
  0x46   :  { %170 = vmatpush1.msra.mxu0 %v53_v63  ;;  %241 = vmatpush1.msra.mxu1 %v55_v0 }
  0x47   :  { %204 = vmatmul.mubr.f32.vlgmr.msra.gmra.mxu0 %v52_v1  ;;  %275 = vmatmul.mubr.f32.vlgmr.msra.gmra.mxu1 %v52_v1 }
 0x107   :  { %v205_v13 = vpop.f32.mrf.mxu0  ;;  %v276_v14 = vpop.f32.mrf.mxu1 }
 0x108   :  { %v206_v15 = vadd.f32 %v205_v13, %v122_v9  ;;  %v277_v16 = vadd.f32 %v276_v14, %v130_v10 }
 0x109   :  { %v207_v17 = vpop.f32.mrf.mxu0  ;;  %v278_v18 = vpop.f32.mrf.mxu1 }
 0x10a   :  { %281 = vst [vmem:[#allocation8] sm:$0xff] %v206_v15  ;;  %283 = vst [vmem:[#allocation8 + $0x10] sm:$0xff] %v277_v16  ;;  %v208_v19 = vadd.f32 %v207_v17, %v126_v11  ;;  %v279_v20 = vadd.f32 %v278_v18, %v134_v12 }
 0x10c   :  { %282 = vst [vmem:[#allocation8 + $0x8] sm:$0xff] %v208_v19  ;;  %284 = vst [vmem:[#allocation8 + $0x18] sm:$0xff] %v279_v20 }
 0x10d   :  { %379 = shalt.err (!%p376_p5)
}
 0x10e   :  { %294 = dma.vmem_to_hbm [thread:$0]  %s292_s2, 512, %s436_s3, [#allocation4]  }
 0x10f   :  { %392 = dma.done.wait [#allocation4], 512  }
 0x110   :  { %393 = vsyncadd [#allocation4], 4294966784 }
 0x111   :  { %298 = vsyncpa [#allocation3], 1 }
 0x112   :  { %299 = vsyncpa [#allocation6], 1 }
 0x113   :  { %300 = vsyncpa [#allocation4], 1 }

</bundles_post_ra>
